<compile_context>
chip_gen: v5e
topology: v5e:2x2
jax: 0.10.0
libtpu: 0.0.40
codegen_flags: <defaults>
</compile_context>

<pallas_src>
import functools

import jax
import jax.numpy as jnp
from jax.experimental import pallas as pl
from jax.experimental.pallas import tpu as pltpu


def se_kernel(x_ref, w1_ref, b1_ref, w2_ref, b2_ref, o_ref, *,
              inv_hw, hw_chunk, scale_dtype):
    """One grid step: a (BN, C, HW) block of samples, NCHW layout (HW on lanes).

    x_ref : (BN, C, HW)   input block
    w1_ref: (C_se, C)     conv1 weight (native orientation / dtype)
    b1_ref: (C_se, 1)
    w2_ref: (C, C_se)     conv2 weight
    b2_ref: (C, 1)
    o_ref : (BN, C, HW)
    """
    bn, c, hw = x_ref.shape
    chunks = [(s, min(s + hw_chunk, hw)) for s in range(0, hw, hw_chunk)]

    # Small resident operands (constant index_map => DMA'd once, reused).
    w1 = w1_ref[...]
    w2 = w2_ref[...]
    b1 = b1_ref[...].astype(jnp.float32)
    b2 = b2_ref[...].astype(jnp.float32)

    for b in range(bn):
        # --- Squeeze: chunked global average pool over HW (lane axis), f32
        #     accumulation; temporaries stay at (C, hw_chunk).
        acc = jnp.zeros((c, 1), jnp.float32)
        for s, e in chunks:
            xc = x_ref[b, :, s:e]                                   # (C, chunk)
            acc = acc + jnp.sum(xc.astype(jnp.float32), axis=-1, keepdims=True)
        pooled = acc * inv_hw                                       # (C, 1)

        # --- Excite: two 1x1 convs as matvecs (f32 accumulation on the MXU);
        #     weights stay in their native dtype.
        hcol = jnp.dot(w1, pooled.astype(w1.dtype),
                       preferred_element_type=jnp.float32)          # (C_se, 1)
        hcol = jnp.maximum(hcol + b1, 0.0)
        gcol = jnp.dot(w2, hcol.astype(w2.dtype),
                       preferred_element_type=jnp.float32)          # (C, 1)
        gate = jax.nn.sigmoid(gcol + b2).astype(scale_dtype)        # (C, 1)

        # --- Scale: chunked multiply, straight from x_ref slices into o_ref
        #     (single-lane gate broadcast over the HW lane axis).
        for s, e in chunks:
            xc = x_ref[b, :, s:e].astype(scale_dtype)
            o_ref[b, :, s:e] = (xc * gate).astype(o_ref.dtype)


def _tpu_generation():
    try:
        kind = jax.devices()[0].device_kind.lower()
    except Exception:
        return None
    for tag in ("v7", "v6", "v5"):
        if tag in kind:
            return tag
    return None


def _generation_config(generation):
    """Returns (tile_budget_bytes, min_grid_steps, vmem_limit_bytes)."""
    if generation == "v5":
        # 1 TC, 128 MiB VMEM (16 MiB scoped default): raise the limit and
        # maximize tile size; no reason to force more grid steps.
        return 12 << 20, 1, 64 << 20
    if generation == "v6":
        # 1 TC, 128 MiB VMEM (32 MiB scoped default): big tiles, but keep >=4
        # steps so input prefetch / output writeback still overlap.
        return 10 << 20, 4, 64 << 20
    if generation == "v7":
        # 2 TCs, 64 MiB VMEM (32 MiB scoped default): modest tiles and >=8
        # steps (>=4 per TensorCore) so each core keeps its DMAs pipelined.
        return 6 << 20, 8, 40 << 20
    # Unknown / mock backend: stay under the smallest default scoped limit.
    return int(2.5 * (1 << 20)), 2, None


def _pick_batch_block(n, per_sample_bytes, tile_budget, min_steps, max_bn=64):
    """Largest divisor of n whose tile fits the budget and keeps the grid at
    >= min(min_steps, n) steps.  bn=1 always qualifies => no batch padding."""
    target_steps = min(min_steps, n)
    best = 1
    for bn in range(1, min(n, max_bn) + 1):
        if n % bn:
            continue
        if bn * per_sample_bytes > tile_budget:
            continue
        if n // bn < target_steps:
            continue
        best = bn
    return best


def _pick_hw_chunk(c, hw, chunk_budget_bytes=1 << 20):
    """HW chunk (multiple of 128 lanes) whose f32 temp stays ~<= the budget."""
    chunk = (chunk_budget_bytes // (c * 4)) // 128 * 128
    return min(hw, max(128, chunk))


def _scale_dtype(x_dtype, generation):
    x_dtype = jnp.dtype(x_dtype)
    if x_dtype == jnp.dtype(jnp.bfloat16) and generation == "v5":
        return jnp.float32   # v5e has no bf16 VALU; narrow only at the store.
    return x_dtype


def se_module(x, w1, b1, w2, b2, *, generation=None):
    """SE forward (avg_pool variant).  x: (N, C, H, W); w1: (C_se, C, 1, 1);
    b1: (C_se,); w2: (C, C_se, 1, 1); b2: (C,).  Returns (N, C, H, W)."""
    n, c, h, w = x.shape
    c_se = w1.shape[0]
    hw = h * w
    itemsize = jnp.dtype(x.dtype).itemsize

    if generation is None:
        generation = _tpu_generation()
    tile_budget, min_steps, vmem_limit = _generation_config(generation)

    per_sample_bytes = c * hw * itemsize
    bn = _pick_batch_block(n, per_sample_bytes, tile_budget, min_steps)
    hw_chunk = _pick_hw_chunk(c, hw)

    # NCHW kept end-to-end: these reshapes move no data.
    x_v = x.reshape(n, c, hw)
    w1_m = w1.reshape(c_se, c)
    w2_m = w2.reshape(c, c_se)
    b1_c = b1.reshape(c_se, 1)
    b2_c = b2.reshape(c, 1)

    kernel = functools.partial(
        se_kernel, inv_hw=1.0 / hw, hw_chunk=hw_chunk,
        scale_dtype=_scale_dtype(x.dtype, generation))

    cost = pl.CostEstimate(
        flops=4 * n * c * c_se + 2 * n * hw * c,      # excite matvecs + pool/scale
        transcendentals=n * c,                        # sigmoid
        bytes_accessed=2 * n * hw * c * itemsize,     # HBM-bound: read + write x
    )

    cp_kwargs = dict(dimension_semantics=("parallel",))
    if vmem_limit is not None:
        cp_kwargs["vmem_limit_bytes"] = vmem_limit

    out = pl.pallas_call(
        kernel,
        out_shape=jax.ShapeDtypeStruct((n, c, hw), x.dtype),
        grid_spec=pltpu.PrefetchScalarGridSpec(
            num_scalar_prefetch=0,
            grid=(n // bn,),
            in_specs=[
                pl.BlockSpec((bn, c, hw), lambda i: (i, 0, 0)),
                # Weights/biases: constant index_map => DMA'd once, resident.
                pl.BlockSpec((c_se, c), lambda i: (0, 0)),
                pl.BlockSpec((c_se, 1), lambda i: (0, 0)),
                pl.BlockSpec((c, c_se), lambda i: (0, 0)),
                pl.BlockSpec((c, 1), lambda i: (0, 0)),
            ],
            out_specs=pl.BlockSpec((bn, c, hw), lambda i: (i, 0, 0)),
        ),
        compiler_params=pltpu.CompilerParams(**cp_kwargs),
        cost_estimate=cost,
    )(x_v, w1_m, b1_c, w2_m, b2_c)

    return out.reshape(n, c, h, w)


def se_reference(x, w1, b1, w2, b2):
    # Pure-JAX (f32) reference of the PyTorch forward, avg_pool variant.
    n, c, h, w = x.shape
    c_se = w1.shape[0]
    xf = x.astype(jnp.float32)
    pooled = jnp.mean(xf, axis=(2, 3))                                    # (N, C)
    hid = jax.nn.relu(pooled @ w1.reshape(c_se, c).astype(jnp.float32).T
                      + b1.astype(jnp.float32))                           # (N, C_se)
    gate = jax.nn.sigmoid(hid @ w2.reshape(c, c_se).astype(jnp.float32).T
                          + b2.astype(jnp.float32))                       # (N, C)
    return xf * gate[:, :, None, None]


if __name__ == "__main__":
    key = jax.random.PRNGKey(0)
    k_x, k_w1, k_b1, k_w2, k_b2 = jax.random.split(key, 5)

    N, C, H, W = 2, 4, 16, 16
    C_SE = 8

    x = jax.random.normal(k_x, (N, C, H, W), dtype=jnp.float32)
    # Deterministic synthetic parameters (1x1 conv kernels).
    w1 = jax.random.normal(k_w1, (C_SE, C, 1, 1), dtype=jnp.float32) * 0.5
    b1 = jax.random.normal(k_b1, (C_SE,), dtype=jnp.float32) * 0.1
    w2 = jax.random.normal(k_w2, (C, C_SE, 1, 1), dtype=jnp.float32) * 0.5
    b2 = jax.random.normal(k_b2, (C,), dtype=jnp.float32) * 0.1

    # float32 path
    out = se_module(x, w1, b1, w2, b2)
    jax.block_until_ready(out)
    ref = se_reference(x, w1, b1, w2, b2)
    assert out.shape == (N, C, H, W)
    assert jnp.allclose(out, ref, atol=1e-5, rtol=1e-5)

    # bfloat16 path (per review: exercise the reduced-precision gate/scale path).
    xb = x.astype(jnp.bfloat16)
    w1b, b1b = w1.astype(jnp.bfloat16), b1.astype(jnp.bfloat16)
    w2b, b2b = w2.astype(jnp.bfloat16), b2.astype(jnp.bfloat16)
    out_b = se_module(xb, w1b, b1b, w2b, b2b)
    jax.block_until_ready(out_b)
    ref_b = se_reference(xb, w1b, b1b, w2b, b2b)
    assert out_b.dtype == jnp.bfloat16
    assert jnp.allclose(out_b.astype(jnp.float32), ref_b, atol=5e-2, rtol=5e-2)

    print("KERNEL_OK")
</pallas_src>

<mosaic_0001>
module attributes {stable_mosaic.version = 11 : i64} {
  func.func @se_kernel(%arg0: i32, %arg1: memref<1x4x256xf32, #tpu.memory_space<vmem>>, %arg2: memref<8x4xf32, #tpu.memory_space<vmem>>, %arg3: memref<8x1xf32, #tpu.memory_space<vmem>>, %arg4: memref<4x8xf32, #tpu.memory_space<vmem>>, %arg5: memref<4x1xf32, #tpu.memory_space<vmem>>, %arg6: memref<1x4x256xf32, #tpu.memory_space<vmem>>) attributes {dimension_semantics = [#tpu.dimension_semantics<parallel>], iteration_bounds = array<i64: 2>, scalar_prefetch = 0 : i64, scratch_operands = 0 : i64, tpu.core_type = #tpu.core_type<tc>, window_params = [{transform_indices = @transform_0, window_bounds = array<i64: 1, 4, 256>}, {pipeline_mode = #tpu.pipeline_mode<synchronous>, transform_indices = @transform_1, window_bounds = array<i64: 8, 4>}, {pipeline_mode = #tpu.pipeline_mode<synchronous>, transform_indices = @transform_2, window_bounds = array<i64: 8, 1>}, {pipeline_mode = #tpu.pipeline_mode<synchronous>, transform_indices = @transform_3, window_bounds = array<i64: 4, 8>}, {pipeline_mode = #tpu.pipeline_mode<synchronous>, transform_indices = @transform_4, window_bounds = array<i64: 4, 1>}, {transform_indices = @transform_5, window_bounds = array<i64: 1, 4, 256>}]} {
    %c0 = arith.constant 0 : index
    %c0_0 = arith.constant 0 : index
    %0 = vector.load %arg2[%c0, %c0_0] : memref<8x4xf32, #tpu.memory_space<vmem>>, vector<8x4xf32>
    %c0_1 = arith.constant 0 : index
    %c0_2 = arith.constant 0 : index
    %1 = vector.load %arg4[%c0_1, %c0_2] : memref<4x8xf32, #tpu.memory_space<vmem>>, vector<4x8xf32>
    %c0_3 = arith.constant 0 : index
    %c0_4 = arith.constant 0 : index
    %2 = vector.load %arg3[%c0_3, %c0_4] : memref<8x1xf32, #tpu.memory_space<vmem>>, vector<8x1xf32>
    %c0_5 = arith.constant 0 : index
    %c0_6 = arith.constant 0 : index
    %3 = vector.load %arg5[%c0_5, %c0_6] : memref<4x1xf32, #tpu.memory_space<vmem>>, vector<4x1xf32>
    %cst = arith.constant 0.000000e+00 : f32
    %4 = vector.broadcast %cst : f32 to vector<4x1xf32>
    %c0_7 = arith.constant 0 : index
    %c0_8 = arith.constant 0 : index
    %c0_9 = arith.constant 0 : index
    %5 = vector.load %arg1[%c0_7, %c0_8, %c0_9] : memref<1x4x256xf32, #tpu.memory_space<vmem>>, vector<1x4x256xf32>
    %6 = vector.shape_cast %5 : vector<1x4x256xf32> to vector<4x256xf32>
    %cst_10 = arith.constant dense<0.000000e+00> : vector<4xf32>
    %7 = vector.multi_reduction <add>, %6, %cst_10 [1] : vector<4x256xf32> to vector<4xf32>
    %8 = vector.shape_cast %7 : vector<4xf32> to vector<4x1xf32>
    %9 = arith.addf %4, %8 : vector<4x1xf32>
    %cst_11 = arith.constant 3.906250e-03 : f32
    %10 = vector.broadcast %cst_11 : f32 to vector<4x1xf32>
    %11 = arith.mulf %9, %10 : vector<4x1xf32>
    %cst_12 = arith.constant dense<0.000000e+00> : vector<8x1xf32>
    %12 = tpu.matmul %0, %11, %cst_12 {dimension_numbers = #tpu.dot_dimension_numbers<[1], [0], [0], [1], [0, 0, 1, 1], [], []>} : vector<8x4xf32>, vector<4x1xf32>, vector<8x1xf32> -> vector<8x1xf32>
    %13 = arith.addf %12, %2 : vector<8x1xf32>
    %cst_13 = arith.constant 0.000000e+00 : f32
    %14 = vector.broadcast %cst_13 : f32 to vector<8x1xf32>
    %15 = arith.maximumf %13, %14 : vector<8x1xf32>
    %cst_14 = arith.constant dense<0.000000e+00> : vector<4x1xf32>
    %16 = tpu.matmul %1, %15, %cst_14 {dimension_numbers = #tpu.dot_dimension_numbers<[1], [0], [0], [1], [0, 0, 1, 1], [], []>} : vector<4x8xf32>, vector<8x1xf32>, vector<4x1xf32> -> vector<4x1xf32>
    %17 = arith.addf %16, %3 : vector<4x1xf32>
    %18 = arith.negf %17 : vector<4x1xf32>
    %19 = math.exp %18 : vector<4x1xf32>
    %cst_15 = arith.constant 1.000000e+00 : f32
    %20 = vector.broadcast %cst_15 : f32 to vector<4x1xf32>
    %21 = arith.addf %20, %19 : vector<4x1xf32>
    %22 = arith.divf %20, %21 : vector<4x1xf32>
    %c0_16 = arith.constant 0 : index
    %c0_17 = arith.constant 0 : index
    %c0_18 = arith.constant 0 : index
    %23 = vector.load %arg1[%c0_16, %c0_17, %c0_18] : memref<1x4x256xf32, #tpu.memory_space<vmem>>, vector<1x4x256xf32>
    %24 = vector.shape_cast %23 : vector<1x4x256xf32> to vector<4x256xf32>
    %25 = vector.broadcast %22 : vector<4x1xf32> to vector<4x256xf32>
    %26 = arith.mulf %24, %25 : vector<4x256xf32>
    %c0_19 = arith.constant 0 : index
    %c0_20 = arith.constant 0 : index
    %c0_21 = arith.constant 0 : index
    %27 = vector.load %arg6[%c0_19, %c0_20, %c0_21] : memref<1x4x256xf32, #tpu.memory_space<vmem>>, vector<1x4x256xf32>
    %28 = vector.shape_cast %27 : vector<1x4x256xf32> to vector<4x256xf32>
    %29 = vector.shape_cast %26 : vector<4x256xf32> to vector<1x4x256xf32>
    tpu.vector_store %arg6[%c0_19, %c0_20, %c0_21], %29 {strides = array<i32>} : memref<1x4x256xf32, #tpu.memory_space<vmem>>, vector<1x4x256xf32>,
    return
  }
  func.func @transform_0(%arg0: i32) -> (i32, i32, i32) {
    %c0_i32 = arith.constant 0 : i32
    %c0_i32_0 = arith.constant 0 : i32
    %c0_i32_1 = arith.constant 0 : i32
    return %arg0, %c0_i32, %c0_i32_0 : i32, i32, i32
  }
  func.func @transform_1(%arg0: i32) -> (i32, i32) {
    %c0_i32 = arith.constant 0 : i32
    %c0_i32_0 = arith.constant 0 : i32
    %c0_i32_1 = arith.constant 0 : i32
    return %c0_i32, %c0_i32_0 : i32, i32
  }
  func.func @transform_2(%arg0: i32) -> (i32, i32) {
    %c0_i32 = arith.constant 0 : i32
    %c0_i32_0 = arith.constant 0 : i32
    %c0_i32_1 = arith.constant 0 : i32
    return %c0_i32, %c0_i32_0 : i32, i32
  }
  func.func @transform_3(%arg0: i32) -> (i32, i32) {
    %c0_i32 = arith.constant 0 : i32
    %c0_i32_0 = arith.constant 0 : i32
    %c0_i32_1 = arith.constant 0 : i32
    return %c0_i32, %c0_i32_0 : i32, i32
  }
  func.func @transform_4(%arg0: i32) -> (i32, i32) {
    %c0_i32 = arith.constant 0 : i32
    %c0_i32_0 = arith.constant 0 : i32
    %c0_i32_1 = arith.constant 0 : i32
    return %c0_i32, %c0_i32_0 : i32, i32
  }
  func.func @transform_5(%arg0: i32) -> (i32, i32, i32) {
    %c0_i32 = arith.constant 0 : i32
    %c0_i32_0 = arith.constant 0 : i32
    %c0_i32_1 = arith.constant 0 : i32
    return %arg0, %c0_i32, %c0_i32_0 : i32, i32, i32
  }
}

</mosaic_0001>

<bundles_post_ra>
// kernel: tpu_custom_call.1
= control target key start
LH: loop header
LB: loop body
LE: loop exit
PB: predicated region body
PF: predicated region fallthrough
CT: control target
= control target key end

     0   :  { %10 = vsyncpa [#allocation3], 0  ;;  %s657_s0 = inlined_call_operand.vmem [shape: f32[2,4,256], index: 0, kind: input, shape index: {}]   ;;  %s658_s1 = inlined_call_operand.vmem [shape: f32[8,4], index: 1, kind: input, shape index: {}]   ;;  %s659_s2 = inlined_call_operand.vmem [shape: f32[8,1], index: 2, kind: input, shape index: {}]   ;;  %s660_s3 = inlined_call_operand.vmem [shape: f32[4,8], index: 3, kind: input, shape index: {}]   ;;  %s661_s4 = inlined_call_operand.vmem [shape: f32[4,1], index: 4, kind: input, shape index: {}]   ;;  %s662_s5 = inlined_call_operand.hbm [shape: f32[2,4,256], index: 5, kind: output, shape index: {}]  }
   0x1   :  { %12 = vsyncpa [#allocation3 + $0x1], 0  ;;  %s560_s18 = smov 0   ;;  %s562_s19 = smov 0  }
   0x2   :  { %s564_s20 = smov 0   ;;  %s566_s21 = smov 0  }
   0x3 LB: > { %s581_s22 = sadd.s32 4294967295, %s526_s21   ;;  %s400_s23 = sadd.s32 4294967294, %s526_s21   ;;  %s526_s21 = sphi %s566_s21, %s668_s21   ;;  %s522_s20 = sphi %s564_s20, %s667_s20   ;;  %s518_s19 = sphi %s562_s19, %s666_s19   ;;  %s514_s18 = sphi %s560_s18, %s665_s18  }
   0x4   : > { %s585_s24 = sadd.s32 1, %s526_s21   ;;  %s135_s25 = sadd.s32 1, %s522_s20 }
   0x5   : > { %s132_s26 = ssub.s32 %s526_s21, %s585_s24  ;;  %p145_p0 = scmp.ne.s32.totalorder %s522_s20, %s518_s19 }
   0x6   : > { %p133_p1 = scmp.eq.s32.totalorder %s132_s26, 0  ;;  %p146_p2 = scmp.eq.s32.totalorder %s581_s22, 1 }
   0x7   : > { %p151_p3 = scmp.ne.s32.totalorder %s518_s19, %s514_s18  ;;  %p152_p4 = scmp.eq.s32.totalorder %s400_s23, 1 }
   0x8   : > { %s596_s27 = scalar_select %p133_p1, %s522_s20, %s135_s25  }
   0x9   : > { %p598_p5 = por %p146_p2, %p145_p0  ;;  %p602_p6 = por %p152_p4, %p151_p3 }
   0xa   : > { %p403_p7 = scmp.ge.s32.totalorder %s526_s21, 1  ;;  %p190_p8 = scmp.lt.s32.totalorder %s526_s21, 3 }
   0xc   : > { %p191_p9 = pnand %p403_p7, %p190_p8 }
   0xd   : > { %p218_p10 = scmp.lt.s32.totalorder (!%p191_p9), %s581_s22, 1  ;;  %s215_s23 = sand.u32 (!%p191_p9), 1, %s518_s19  }
   0xe   : > { %194 = sbr.rel (%p191_p9) target bundleno = 563 (0x233), region = 40  ;;  %s404_s25 = sshll.u32 (!%p191_p9), %s215_s23, 3 }
   0xf   : > { %s417_s26 = sshll.u32 (!%p191_p9), %s581_s22, 3  ;;  %s217_s8 = scalar_lea.vmem (!%p191_p9), [#allocation2], %s404_s25 }
  0x10   : > { %s336_s7 = scalar_lea.hbm (!%p191_p9), %s662_s5, %s417_s26  ;;  %s325_s11 = scalar_lea.sflag (!%p191_p9), [#allocation3], %s215_s23 }
  0x11   : > { %s340_s10 = sshll.u32 (!%p191_p9), %s336_s7, 4  ;;  %s484_s15 = scalar_lea.hbm (!%p191_p9), %s662_s5, 16  ;;  %s341_s10 = int_to_ptr.hbm [resolvable:$true] %s340_s10 }
  0x12   : > { %s478_s12 = sshra.s32 (!%p191_p9), %s341_s10, 4  ;;  %s479_s12 = int_to_ptr.hbm [resolvable:$true] %s478_s12 }
  0x13   : > { %s219_s30 = scalar_select %p218_p10, %s581_s22, 1  ;;  %vm234_vm0 = vcmask 1043456   ;;  %v223_v8 = vld [vmem:[%s658_s1] sm:$0xff]  ;;  %vm242_vm1 = vcmask 31744   ;;  %vm270_vm2 = vcmask 64512   ;;  %v528_v14 = vmov 0  }
  0x14   : > { %v225_v9 = vld [vmem:[%s659_s2] sm:$0xff]  ;;  %459 = vset.pattern.permute.xlu0 %v528_v14  ;;  %v529_v31 = vmov 839922192   ;;  %s480_s13 = scalar_lea.hbm %s479_s12, 8  ;;  %p485_p0 = scmp.lt.s32.totalorder %s479_s12, %s662_s5 }
  0x15   : > { %s416_s6 = sshll.u32 %s219_s30, 3  ;;  %v224_v13 = vld [vmem:[%s660_s3] sm:$0xf]  ;;  %v318_v32 = vunpack.c.l.s4 %v529_v31  ;;  %p481_p11 = scmp.ne.s32.totalorder %s479_s12, %s480_s13 }
  0x16   : > { %s222_s9 = scalar_lea.vmem %s657_s0, %s416_s6  ;;  %v226_v15 = vld [vmem:[%s661_s4] sm:$0xf]  ;;  %p486_p1 = scmp.lt.s32.totalorder %s484_s15, %s480_s13 }
  0x17   : > { %v227_v0 = vld [vmem:[%s222_s9] sm:$0xff]  ;;  %v319_v33 = vunpack.c.0.s8 %v318_v32  ;;  %s338_s9 = sshll.u32 %s217_s8, 4  ;;  %p482_p12 = pnand %p481_p11, %p598_p5  ;;  %s339_s9 = int_to_ptr.vmem [resolvable:$true] %s338_s9 }
  0x18   : > { %229 = vst [vmem:[#allocation1] ss:$2 sm:$0xff] %v227_v0  ;;  %p487_p2 = por %p486_p1, %p485_p0 }
  0x19   : > { %p483_p13 = pneg %p482_p12 }
  0x1b   : > { %p488_p3 = pnand %p487_p2, %p483_p13 }
  0x1f   : > { %v230_v1 = vld.sshfl [vmem:[#allocation1] sm:$0xff pattern:$0x75316420]  ;;  %v231_v2 = vld.sshfl [vmem:[#allocation1 + $0x8] sm:$0xff pattern:$0x75316420] }
  0x20   : > { %v235_v3 = vsel %vm234_vm0, %v230_v1, 0.0  ;;  %v236_v4 = vsel %vm234_vm0, %v231_v2, 0.0 }
  0x21   : > { %v237_v5 = vadd.f32 %v236_v4, %v235_v3 }
  0x23   : > { %238 = vadd.xlane.f32.xlu0 %v237_v5 }
  0x96   : > { %v239_v6 = vpop.xlane.xlu0 %238 }
  0x97   : > { %v241_v7 = vmul.f32 0.00390625, %v239_v6 }
  0x99   : > { %407 = vmatpush.msk.msra.mxu0 %vm234_vm0, %v241_v7 }
  0x9a   : > { %408 = vmatmul.msk.f32.vlgmr.msra.gmra.mxu0 %vm242_vm1, %v223_v8 }
 0x117   : > { %v266_v10 = vpop.f32.mrf.mxu0 }
 0x118   : > { %v267_v11 = vadd.f32 %v266_v10, %v225_v9 }
 0x11a   : > { %v269_v12 = vmax.f32 %v267_v11, 0.0 }
 0x11c   : > { %289 = vmatpush.msra.mxu1 %v269_v12 }
 0x11d   : > { %409 = vmatmul.msk.f32.vlgmr.msra.gmra.mxu1 %vm270_vm2, %v224_v13 }
 0x19a   : > { %v291_v16 = vpop.f32.mrf.mxu1 }
 0x19b   : > { %v292_v17 = vadd.f32 %v291_v16, %v226_v15 }
 0x19d   : > { %v410_v18 = vmul.f32 -1.442695, %v292_v17 }
 0x19f   : > { %460 = vpow2.f32 %v410_v18 }
 0x1a5   : > { %v461_v19 = vpop.eup %460 }
 0x1a6   : > { %v297_v20 = vadd.f32 1.0, %v461_v19 }
 0x1a8   : > { %462 = vrcp.f32 %v297_v20  ;;  %v309_v24 = vand.u32 2147483648, %v297_v20  ;;  %v307_v26 = vand.u32 2147483647, %v297_v20  ;;  %vm303_vm4 = vweird.f32 %v297_v20 }
 0x1aa   : > { %v310_v28 = vor.u32 1.1754944e-38, %v309_v24  ;;  %vm308_vm6 = vcmp.eq.f32.partialorder %v307_v26, 8.507059e+37 }
 0x1ae   : > { %v463_v21 = vpop.eup %462 }
 0x1af   : > { %v299_v22 = vmul.f32 %v463_v21, %v297_v20  ;;  %vm304_vm3 = vweird.f32 %v463_v21 }
 0x1b0   : > { %vm305_vm5 = vmor %vm303_vm4, %vm304_vm3 }
 0x1b1   : > { %v300_v23 = vsub.f32 1.0, %v299_v22 }
 0x1b3   : > { %v301_v25 = vmul.f32 %v463_v21, %v300_v23 }
 0x1b5   : > { %v302_v27 = vadd.f32 %v463_v21, %v301_v25 }
 0x1b7   : > { %v306_v29 = vsel %vm305_vm5, %v463_v21, %v302_v27 }
 0x1b8   : > { %v311_v30 = vsel %vm308_vm6, %v310_v28, %v306_v29 }
 0x1b9   : > { %315 = vperm.xlu0 %459, %v311_v30  }
 0x22b   : > { %v316_v34 = vpop.permute.xlu0 %315 }
 0x22c   : > { %v320_v35 = vperm.slane %v316_v34, %v319_v33 }
 0x22e   : > { %v322_v36 = vmul.f32 %v320_v35, %v227_v0 }
 0x230   : > { %323 = vst [vmem:[%s217_s8] sm:$0xff] %v322_v36 }
 0x231   : > { %491 = shalt.err (!%p488_p3)
}
 0x232   : > { %418 = dma.vmem_to_hbm [thread:$0]  (%p598_p5), %s339_s9, 128, %s341_s10, %s325_s11  }
 0x233 PF: > { %p424_p4 = scmp.ge.s32.totalorder %s526_s21, 2  ;;  %s352_s23 = sand.u32 1, %s514_s18  }
 0x234   : > { %s353_s25 = scalar_lea.sflag [#allocation3], %s352_s23 }
 0x235   : > { %p421_p7 = pnand %p424_p4, %p602_p6 }
 0x237   : > { %p422_p8 = pneg %p421_p7 }
 0x239   : > { %509 = dma.done.wait (%p422_p8), %s353_s25, 128  }
 0x23a   : > { %511 = vsyncadd (%p422_p8), %s353_s25, 4294967168  ;;  %p15_p9 = scmp.ge.s32.totalorder %s585_s24, 4   ;;  %s665_s18 = smov %s518_s19 }
 0x23b   : > { %s666_s19 = smov %s522_s20  ;;  %s667_s20 = smov %s596_s27 }
 0x23c   : > { %s668_s21 = smov %s585_s24  ;;  %17 = sbr.rel (!%p15_p9) target bundleno = 3 (0x3), region = 75 }
 0x241   :  { %359 = vsyncpa [#allocation3], 1 }
 0x242   :  { %361 = vsyncpa [#allocation3 + $0x1], 1 }

</bundles_post_ra>
